<compile_context>
chip_gen: v6e
topology: v6e:2x2x1
jax: 0.10.0
libtpu: 0.0.40
codegen_flags: <defaults>
</compile_context>

<pallas_src>
import math

import jax
import jax.numpy as jnp
from jax.experimental import pallas as pl
from jax.experimental.pallas import tpu as pltpu


# ----------------------------------------------------------------------------
# Pallas kernel: identity / pass-through copy (the only compute ModelBase has)
# ----------------------------------------------------------------------------
def _copy_kernel(x_ref, o_ref):
    o_ref[...] = x_ref[...]


def _round_up(x: int, m: int) -> int:
    return ((x + m - 1) // m) * m


_LANE_CANDIDATES = (2048, 1024, 512, 256, 128)
_BLOCK_BYTES_TARGET = 2 * 1024 * 1024  # ~2 MiB per block; 4x double-buffered = 8 MiB
_SMALL_BYTES = 64 * 1024               # below this, skip the kernel entirely


def _select_layout(total: int, itemsize: int):
    """Pick (LANE, rows, TM, pad_elems) for a lane-dense tiled copy."""
    # Lane width: largest multiple-of-128 that divides total (no padding);
    # else fall back to 128 with a minimal (<128 element) tail pad.
    lane = None
    for cand in _LANE_CANDIDATES:
        if total % cand == 0:
            lane = cand
            break
    if lane is None:
        lane = 128
    pad = _round_up(total, lane) - total
    rows = (total + pad) // lane

    # Dtype-aware sublane multiple: (8,128) f32 / (16,128) bf16 / (32,128) int8.
    sub = {4: 8, 2: 16, 1: 32}.get(itemsize, 8)

    # Row-tile from a ~2 MiB byte budget (multiple of `sub`).
    tm_budget = max(sub, (_BLOCK_BYTES_TARGET // (lane * itemsize)) // sub * sub)

    if rows > tm_budget:
        tm = tm_budget                      # many tiles; grid >= 2 automatically
    elif rows >= 2 * sub:
        # Fits in one block: still split into ~2 tiles so v7x's 2nd TC has work.
        tm = _round_up(pl.cdiv(rows, 2), sub)
    else:
        tm = rows                           # block row-dim == full array dim (allowed)
    return lane, rows, tm, pad


def pallas_identity(x: jnp.ndarray, *, force_kernel: bool = False) -> jnp.ndarray:
    """Identity of an arbitrary-shaped array, via a tiled Pallas copy kernel.

    Fast path: for empty / small inputs the identity is returned directly
    (no HBM traffic).  Otherwise the array is viewed as a lane-dense
    (rows, LANE) slab and streamed HBM->VMEM->HBM in ~2 MiB double-buffered
    row-tiles.
    """
    orig_shape = x.shape
    orig_dtype = x.dtype
    total = int(math.prod(orig_shape))
    itemsize = jnp.dtype(orig_dtype).itemsize

    # --- fast paths: true identity needs no kernel -------------------------
    if total == 0:
        return x
    if not force_kernel and total * itemsize < _SMALL_BYTES:
        return x

    # --- lane-dense layout --------------------------------------------------
    lane, rows, tm, pad = _select_layout(total, itemsize)

    x_flat = x.reshape(-1)
    if pad:
        # Only a sub-lane-row tail pad (< LANE elements); common case is pad == 0.
        x_flat = jnp.pad(x_flat, (0, pad))
    x2d = x_flat.reshape(rows, lane)

    grid = (pl.cdiv(rows, tm),)
    cost = pl.CostEstimate(
        flops=0,
        transcendentals=0,
        bytes_accessed=2 * rows * lane * itemsize,
    )

    y2d = pl.pallas_call(
        _copy_kernel,
        out_shape=jax.ShapeDtypeStruct((rows, lane), orig_dtype),
        grid=grid,
        in_specs=[pl.BlockSpec((tm, lane), lambda i: (i, 0))],
        out_specs=pl.BlockSpec((tm, lane), lambda i: (i, 0)),
        compiler_params=pltpu.CompilerParams(
            dimension_semantics=("parallel",),
        ),
        cost_estimate=cost,
    )(x2d)

    y_flat = y2d.reshape(-1)
    if pad:
        y_flat = y_flat[:total]
    return y_flat.reshape(orig_shape)


# ----------------------------------------------------------------------------
# ModelBase (abstract) — faithful port of the PyTorch class
# ----------------------------------------------------------------------------
class ModelBase:
    """JAX port of state_inference.model.ModelBase (abstract base)."""

    def __init__(self):
        # PyTorch __init__ defines no parameters / layers.
        pass

    def configure_optimizers(self, lr: float = 3e-4):
        # TODO(synk): torch.optim.Adam is host-side training glue with no
        # in-kernel equivalent; use optax.adam(lr) in practice.
        return {"optimizer": "adam", "lr": lr}

    def forward(self, x):
        # Exact semantics of the PyTorch base class.
        raise NotImplementedError

    def __call__(self, x):
        return self.forward(x)

    def prep_next_batch(self):
        pass


class IdentityModel(ModelBase):
    """Minimal concrete subclass: forward = identity (Pallas copy when large)."""

    def forward(self, x):
        return pallas_identity(x)


# ----------------------------------------------------------------------------
# Demo / smoke test
# ----------------------------------------------------------------------------
if __name__ == "__main__":
    key = jax.random.PRNGKey(0)
    # Small NCHW input consistent with the (conv-style) models built on ModelBase.
    x = jax.random.normal(key, (2, 4, 16, 16), dtype=jnp.float32)

    # 1) Base-class semantics: forward must raise NotImplementedError.
    base = ModelBase()
    try:
        base(x)
        raise AssertionError("ModelBase.forward should have raised")
    except NotImplementedError:
        pass

    # 2) Concrete subclass: identity (small input takes the no-copy fast path).
    model = IdentityModel()
    y = jax.block_until_ready(model(x))
    assert y.shape == x.shape and y.dtype == x.dtype
    assert bool(jnp.array_equal(y, x))

    # 3) Exercise the tiled, lane-dense Pallas copy kernel explicitly (f32).
    y_k = jax.block_until_ready(pallas_identity(x, force_kernel=True))
    assert y_k.shape == x.shape and y_k.dtype == x.dtype
    assert bool(jnp.array_equal(y_k, x))

    # 4) Larger bf16 input: multi-tile grid + dtype-aware (16,128) sublane tiling.
    xb = jax.random.normal(jax.random.PRNGKey(1), (8, 4, 64, 64)).astype(jnp.bfloat16)
    yb = jax.block_until_ready(pallas_identity(xb, force_kernel=True))
    assert yb.shape == xb.shape and yb.dtype == xb.dtype
    assert bool(jnp.array_equal(yb, xb))

    print("KERNEL_OK")
</pallas_src>

<mosaic_0001>
module attributes {stable_mosaic.version = 11 : i64} {
  func.func @_copy_kernel(%arg0: i32, %arg1: memref<1x2048xf32, #tpu.memory_space<vmem>>, %arg2: memref<1x2048xf32, #tpu.memory_space<vmem>>) attributes {dimension_semantics = [#tpu.dimension_semantics<parallel>], iteration_bounds = array<i64: 1>, scalar_prefetch = 0 : i64, scratch_operands = 0 : i64, tpu.core_type = #tpu.core_type<tc>, window_params = [{transform_indices = @transform_0, window_bounds = array<i64: 1, 2048>}, {transform_indices = @transform_1, window_bounds = array<i64: 1, 2048>}]} {
    %c0 = arith.constant 0 : index
    %c0_0 = arith.constant 0 : index
    %0 = vector.load %arg1[%c0, %c0_0] : memref<1x2048xf32, #tpu.memory_space<vmem>>, vector<1x2048xf32>
    %c0_1 = arith.constant 0 : index
    %c0_2 = arith.constant 0 : index
    %1 = vector.load %arg2[%c0_1, %c0_2] : memref<1x2048xf32, #tpu.memory_space<vmem>>, vector<1x2048xf32>
    tpu.vector_store %arg2[%c0_1, %c0_2], %0 {strides = array<i32>} : memref<1x2048xf32, #tpu.memory_space<vmem>>, vector<1x2048xf32>,
    return
  }
  func.func @transform_0(%arg0: i32) -> (i32, i32) {
    %c0_i32 = arith.constant 0 : i32
    %c0_i32_0 = arith.constant 0 : i32
    return %arg0, %c0_i32 : i32, i32
  }
  func.func @transform_1(%arg0: i32) -> (i32, i32) {
    %c0_i32 = arith.constant 0 : i32
    %c0_i32_0 = arith.constant 0 : i32
    return %arg0, %c0_i32 : i32, i32
  }
}

</mosaic_0001>

<bundles_post_ra>
// kernel: tpu_custom_call.1
= control target key start
LH: loop header
LB: loop body
LE: loop exit
PB: predicated region body
PF: predicated region fallthrough
CT: control target
= control target key end

     0   :  { %6 = vsyncpa [#allocation3], 0  ;;  %s104_s0 = inlined_call_operand.hbm [shape: f32[1,2048], index: 0, kind: input, shape index: {}]   ;;  %s105_s1 = inlined_call_operand.hbm [shape: f32[1,2048], index: 1, kind: output, shape index: {}]  }
   0x1   :  { %7 = vsyncpa [#allocation4], 0  ;;  %s86_s6 = smov [#allocation2]  }
   0x2   :  { %s14_s7 = sshll.u32 %s86_s6, 4  ;;  %s15_s7 = int_to_ptr.vmem [resolvable:$true] %s14_s7 }
   0x3   :  { %s50_s8 = scalar_lea.vmem %s15_s7, 256  ;;  %p55_p1 = scmp.lt.s32.totalorder %s15_s7, %s15_s7 }
   0x4   :  { %p51_p0 = scmp.ne.s32.totalorder %s15_s7, %s50_s8  ;;  %p56_p2 = scmp.lt.s32.totalorder %s50_s8, %s50_s8 }
   0x6   :  { %p57_p3 = por %p56_p2, %p55_p1 }
   0x8   :  { %p58_p4 = pnand %p57_p3, %p51_p0 }
   0xa   :  { %61 = shalt.err (!%p58_p4)
}
   0xb   :  { %17 = dma.hbm_to_vmem [thread:$0]  %s104_s0, 256, %s15_s7, [#allocation3]  }
   0xc   :  { %82 = dma.done.wait [#allocation3], 256  }
   0xd   :  { %83 = vsyncadd [#allocation3], 4294967040  ;;  %s87_s11 = smov [#allocation5]   ;;  %v21_v0 = vld [vmem:[#allocation2] sm:$0xff]  ;;  %v22_v1 = vld [vmem:[#allocation2 + $0x8] sm:$0xff] }
   0xe   :  { %s31_s12 = sshll.u32 %s87_s11, 4  ;;  %23 = vst [vmem:[#allocation5] sm:$0xff] %v21_v0  ;;  %24 = vst [vmem:[#allocation5 + $0x8] sm:$0xff] %v22_v1  ;;  %s32_s12 = int_to_ptr.vmem [resolvable:$true] %s31_s12 }
   0xf   :  { %s62_s13 = scalar_lea.vmem %s32_s12, 256  ;;  %p67_p6 = scmp.lt.s32.totalorder %s32_s12, %s32_s12 }
  0x10   :  { %p63_p5 = scmp.ne.s32.totalorder %s32_s12, %s62_s13  ;;  %p68_p7 = scmp.lt.s32.totalorder %s62_s13, %s62_s13 }
  0x12   :  { %p69_p8 = por %p68_p7, %p67_p6 }
  0x14   :  { %p70_p9 = pnand %p69_p8, %p63_p5 }
  0x16   :  { %73 = shalt.err (!%p70_p9)
}
  0x17   :  { %34 = dma.vmem_to_hbm [thread:$0]  %s32_s12, 256, %s105_s1, [#allocation4]  }
  0x18   :  { %84 = dma.done.wait [#allocation4], 256  }
  0x19   :  { %85 = vsyncadd [#allocation4], 4294967040 }
  0x1a   :  { %38 = vsyncpa [#allocation3], 1 }
  0x1b   :  { %39 = vsyncpa [#allocation4], 1 }

</bundles_post_ra>
